<compile_context>
chip_gen: v7x
topology: tpu7x:2x2x1
jax: 0.10.0
libtpu: 0.0.40
codegen_flags: <defaults>
</compile_context>

<pallas_src>
import jax
import jax.numpy as jnp
from jax.experimental import pallas as pl
from jax.experimental.pallas import tpu as pltpu


def _merge_ln_kernel(xa_ref, xb_ref, wa_ref, wb_ref, g_ref, b_ref, o_ref):
    # xa_ref : (TR, W2, 2C)  dh=0 plane of the row-pair tile  -> [x0 | x2]
    # xb_ref : (TR, W2, 2C)  dh=1 plane                       -> [x1 | x3]
    # wa_ref / wb_ref : (2C, 2C) permuted weight halves (bf16)
    # g_ref / b_ref   : (1, 2C)  LayerNorm affine params (f32)
    # o_ref  : (TR, W2, 2C)
    tr, w2, c2 = xa_ref.shape
    m = tr * w2
    # Flatten tokens into the matmul M dim.  Zero-cost relayout when
    # w2 % 8 == 0 (keeps the (8,128) sublane tiling intact) — typical for
    # image resolutions; otherwise correct but pays one tile copy.
    xa = xa_ref[...].reshape(m, c2)
    xb = xb_ref[...].reshape(m, c2)

    # Two accumulating MXU matmuls with f32 accumulation; on v7x the second
    # pass accumulates in-place in the MRB.
    y = jnp.dot(xa, wa_ref[...], preferred_element_type=jnp.float32)
    y = y + jnp.dot(xb, wb_ref[...], preferred_element_type=jnp.float32)

    # LayerNorm over 2C with f32 stats.  sum(y) and sum(y*y) are independent
    # cross-lane reductions (no serial mean -> centered -> var chain);
    # var = E[y^2] - mean^2.  rsqrt goes to the EUP slot.
    inv_c2 = 1.0 / c2
    s1 = jnp.sum(y, axis=-1, keepdims=True)
    s2 = jnp.sum(y * y, axis=-1, keepdims=True)
    mean = s1 * inv_c2
    var = s2 * inv_c2 - mean * mean
    y_hat = (y - mean) * jax.lax.rsqrt(var + 1e-5)
    out = y_hat * g_ref[...] + b_ref[...]
    o_ref[...] = out.reshape(tr, w2, c2).astype(o_ref.dtype)


def _pick_row_tile(n_rows, w2, target_tokens, min_steps=4):
    """Largest divisor TR of n_rows with TR*w2 <= target_tokens tokens.

    Prefers an EVEN grid-step count >= min_steps so v7x's two TensorCores each
    get >= 2 pipelined steps (prologue/epilogue DMA hidden, no load imbalance).
    """
    divisors = [d for d in range(1, n_rows + 1) if n_rows % d == 0]
    fits = [d for d in divisors if d * w2 <= target_tokens] or [1]
    even_multi = [d for d in fits
                  if n_rows // d >= min_steps and (n_rows // d) % 2 == 0]
    if even_multi:
        return max(even_multi)
    multi = [d for d in fits if n_rows // d >= min_steps]
    if multi:
        return max(multi)
    multi2 = [d for d in fits if n_rows // d >= 2]
    return max(multi2) if multi2 else max(fits)


def patch_merging_v2(x, w_reduction, ln_weight, ln_bias, *,
                     compute_dtype=jnp.bfloat16, target_tokens=None):
    """x: [B, H, W, C] -> [B, ceil(H/2), ceil(W/2), 2C]."""
    B, H, W, C = x.shape
    C2, C4 = 2 * C, 4 * C
    assert w_reduction.shape == (C4, C2)
    out_dtype = x.dtype

    # Zero-pad odd spatial dims (matches torch F.pad); no-op when H, W even.
    # TODO(synk): handle the ragged tail row/column in-kernel (mask or
    # pl.BoundedSlice) to avoid the extra HBM pass when odd dims actually occur.
    if (H % 2) or (W % 2):
        x = jnp.pad(x, ((0, 0), (0, H % 2), (0, W % 2), (0, 0)))
    Hp, Wp = x.shape[1], x.shape[2]
    H2, W2 = Hp // 2, Wp // 2

    # bf16 HBM storage for the bandwidth-bound hot path (no-op if the caller
    # already provides bf16 activations upstream).
    xc = x.astype(compute_dtype)

    # Free view: [B*H2, 2, W2, 2C].  Last axis packs (dw, c):
    # dh=0 plane -> [x0 | x2] channels, dh=1 plane -> [x1 | x3].
    xr = xc.reshape(B * H2, 2, W2, C2)
    R = B * H2
    N = R * W2                                    # number of output tokens

    # Absorb the torch concat order [x0, x1, x2, x3] by permuting/splitting the
    # weight rows once (weight-sized work, outside the hot loop).
    wa = jnp.concatenate([w_reduction[0:C], w_reduction[2 * C:3 * C]], axis=0)
    wb = jnp.concatenate([w_reduction[C:2 * C], w_reduction[3 * C:4 * C]], axis=0)
    wa = wa.astype(compute_dtype)
    wb = wb.astype(compute_dtype)
    gamma = ln_weight.reshape(1, C2).astype(jnp.float32)
    beta = ln_bias.reshape(1, C2).astype(jnp.float32)

    # Generation-aware VMEM sizing (128 MiB on v5e/v6e, 64 MiB per TC on v7x).
    try:
        vmem_cap = int(pltpu.get_tpu_info().vmem_capacity_bytes)
    except Exception:                      # conservative fallback (v7x per-TC)
        vmem_cap = 64 << 20
    vmem_limit_max = min(int(vmem_cap * 3 // 4), vmem_cap - (8 << 20))
    if target_tokens is None:
        target_tokens = 4096 if vmem_cap >= (96 << 20) else 2048

    in_item = jnp.dtype(compute_dtype).itemsize
    out_item = jnp.dtype(out_dtype).itemsize
    weight_bytes = 2 * C2 * C2 * in_item                  # wa + wb
    per_token_bytes = 2 * C2 * in_item + C2 * out_item    # 4C in + 2C out
    avail = max(vmem_limit_max - 2 * weight_bytes - (1 << 20), 2 << 20)
    tok_cap = int(min(target_tokens, max(avail // (2 * per_token_bytes), W2)))
    TR = _pick_row_tile(R, W2, tok_cap, min_steps=4)
    grid = (R // TR,)

    in_block = TR * W2 * C2 * in_item                     # one dh plane
    out_block = TR * W2 * C2 * out_item
    need = (2 * (2 * in_block + out_block) + 2 * weight_bytes
            + 4 * C2 * 4 + (2 << 20))
    # TODO(synk): add a second grid axis over W2 so a TR=1 tile can never
    # exceed the per-TC VMEM limit for extreme W2*C2.
    vmem_limit = int(min(max(need, 16 << 20), vmem_limit_max))

    cost = pl.CostEstimate(
        flops=int(2 * N * C4 * C2),
        transcendentals=int(N),
        bytes_accessed=int(N * per_token_bytes + weight_bytes + 2 * C2 * 4),
    )

    # TODO(synk): for small-channel configs (2C < 128), DMA-interleave the two
    # dh planes into one (tokens, 4C) scratch so stores/vregs are lane-dense.
    out = pl.pallas_call(
        _merge_ln_kernel,
        out_shape=jax.ShapeDtypeStruct((R, W2, C2), out_dtype),
        grid_spec=pltpu.PrefetchScalarGridSpec(
            num_scalar_prefetch=0,
            grid=grid,
            in_specs=[
                # dh planes split at the DMA level -> separate contiguous VMEM
                # buffers, no in-kernel full-tile load + slice relayout.
                pl.BlockSpec((TR, pl.Squeezed(), W2, C2), lambda i: (i, 0, 0, 0)),
                pl.BlockSpec((TR, pl.Squeezed(), W2, C2), lambda i: (i, 1, 0, 0)),
                pl.BlockSpec((C2, C2), lambda i: (0, 0)),
                pl.BlockSpec((C2, C2), lambda i: (0, 0)),
                pl.BlockSpec((1, C2), lambda i: (0, 0)),
                pl.BlockSpec((1, C2), lambda i: (0, 0)),
            ],
            out_specs=pl.BlockSpec((TR, W2, C2), lambda i: (i, 0, 0)),
        ),
        compiler_params=pltpu.CompilerParams(
            dimension_semantics=("parallel",),
            vmem_limit_bytes=vmem_limit,
        ),
        cost_estimate=cost,
    )(xr, xr, wa, wb, gamma, beta)

    return out.reshape(B, H2, W2, C2)


def _reference(x, w_reduction, ln_weight, ln_bias):
    B, H, W, C = x.shape
    x = jnp.pad(x, ((0, 0), (0, H % 2), (0, W % 2), (0, 0)))
    x0 = x[:, 0::2, 0::2, :]
    x1 = x[:, 1::2, 0::2, :]
    x2 = x[:, 0::2, 1::2, :]
    x3 = x[:, 1::2, 1::2, :]
    xm = jnp.concatenate([x0, x1, x2, x3], axis=-1)
    y = jnp.einsum("bhwk,kd->bhwd", xm, w_reduction,
                   preferred_element_type=jnp.float32)
    mean = jnp.mean(y, axis=-1, keepdims=True)
    var = jnp.mean((y - mean) ** 2, axis=-1, keepdims=True)
    y = (y - mean) / jnp.sqrt(var + 1e-5)
    return y * ln_weight + ln_bias


if __name__ == "__main__":
    key = jax.random.PRNGKey(0)
    k_x, k_w, k_g, k_b = jax.random.split(key, 4)

    # dim = 64 -> 4*dim = 256, 2*dim = 128 (lane-dense output for the demo).
    B, H, W, C = 2, 16, 16, 64
    x = jax.random.normal(k_x, (B, H, W, C), dtype=jnp.float32)

    # nn.Linear(4*dim, 2*dim, bias=False): torch weight is [2C, 4C]; we store
    # the transposed [4C, 2C] matrix (rows in the [x0; x1; x2; x3] cat order).
    w_reduction = jax.random.normal(k_w, (4 * C, 2 * C), dtype=jnp.float32) * 0.05
    # nn.LayerNorm(2*dim) affine params (deterministic, non-trivial).
    ln_weight = 1.0 + 0.1 * jax.random.normal(k_g, (2 * C,), dtype=jnp.float32)
    ln_bias = 0.1 * jax.random.normal(k_b, (2 * C,), dtype=jnp.float32)

    out = patch_merging_v2(x, w_reduction, ln_weight, ln_bias)
    out = jax.block_until_ready(out)
    assert out.shape == (B, H // 2, W // 2, 2 * C), out.shape

    # Reference uses the same bf16-rounded inputs (the kernel's storage dtype)
    # with f32 math, so the comparison isolates kernel error, not cast error.
    x_bf = x.astype(jnp.bfloat16).astype(jnp.float32)
    w_bf = w_reduction.astype(jnp.bfloat16).astype(jnp.float32)
    ref = _reference(x_bf, w_bf, ln_weight, ln_bias)
    max_err = float(jnp.max(jnp.abs(out - ref)))
    assert jnp.allclose(out, ref, atol=2e-3, rtol=2e-3), max_err

    print("KERNEL_OK")
</pallas_src>

<mosaic_0001>
module attributes {stable_mosaic.version = 11 : i64} {
  func.func @_merge_ln_kernel(%arg0: i32, %arg1: memref<4x1x8x128xbf16, #tpu.memory_space<vmem>>, %arg2: memref<4x1x8x128xbf16, #tpu.memory_space<vmem>>, %arg3: memref<128x128xbf16, #tpu.memory_space<vmem>>, %arg4: memref<128x128xbf16, #tpu.memory_space<vmem>>, %arg5: memref<1x128xf32, #tpu.memory_space<vmem>>, %arg6: memref<1x128xf32, #tpu.memory_space<vmem>>, %arg7: memref<4x8x128xf32, #tpu.memory_space<vmem>>) attributes {dimension_semantics = [#tpu.dimension_semantics<parallel>], iteration_bounds = array<i64: 4>, scalar_prefetch = 0 : i64, scratch_operands = 0 : i64, tpu.core_type = #tpu.core_type<tc>, window_params = [{transform_indices = @transform_0, window_bounds = array<i64: 4, 1, 8, 128>}, {transform_indices = @transform_1, window_bounds = array<i64: 4, 1, 8, 128>}, {pipeline_mode = #tpu.pipeline_mode<synchronous>, transform_indices = @transform_2, window_bounds = array<i64: 128, 128>}, {pipeline_mode = #tpu.pipeline_mode<synchronous>, transform_indices = @transform_3, window_bounds = array<i64: 128, 128>}, {pipeline_mode = #tpu.pipeline_mode<synchronous>, transform_indices = @transform_4, window_bounds = array<i64: 1, 128>}, {pipeline_mode = #tpu.pipeline_mode<synchronous>, transform_indices = @transform_5, window_bounds = array<i64: 1, 128>}, {transform_indices = @transform_6, window_bounds = array<i64: 4, 8, 128>}]} {
    %c0 = arith.constant 0 : index
    %c0_0 = arith.constant 0 : index
    %c0_1 = arith.constant 0 : index
    %c0_2 = arith.constant 0 : index
    %0 = vector.load %arg1[%c0, %c0_0, %c0_1, %c0_2] : memref<4x1x8x128xbf16, #tpu.memory_space<vmem>>, vector<4x1x8x128xbf16>
    %1 = vector.shape_cast %0 : vector<4x1x8x128xbf16> to vector<4x8x128xbf16>
    %2 = vector.shape_cast %1 : vector<4x8x128xbf16> to vector<32x128xbf16>
    %c0_3 = arith.constant 0 : index
    %c0_4 = arith.constant 0 : index
    %c0_5 = arith.constant 0 : index
    %c0_6 = arith.constant 0 : index
    %3 = vector.load %arg2[%c0_3, %c0_4, %c0_5, %c0_6] : memref<4x1x8x128xbf16, #tpu.memory_space<vmem>>, vector<4x1x8x128xbf16>
    %4 = vector.shape_cast %3 : vector<4x1x8x128xbf16> to vector<4x8x128xbf16>
    %5 = vector.shape_cast %4 : vector<4x8x128xbf16> to vector<32x128xbf16>
    %c0_7 = arith.constant 0 : index
    %c0_8 = arith.constant 0 : index
    %6 = vector.load %arg3[%c0_7, %c0_8] : memref<128x128xbf16, #tpu.memory_space<vmem>>, vector<128x128xbf16>
    %cst = arith.constant dense<0.000000e+00> : vector<32x128xf32>
    %7 = tpu.matmul %2, %6, %cst {dimension_numbers = #tpu.dot_dimension_numbers<[1], [0], [0], [1], [0, 0, 1, 1], [], []>} : vector<32x128xbf16>, vector<128x128xbf16>, vector<32x128xf32> -> vector<32x128xf32>
    %c0_9 = arith.constant 0 : index
    %c0_10 = arith.constant 0 : index
    %8 = vector.load %arg4[%c0_9, %c0_10] : memref<128x128xbf16, #tpu.memory_space<vmem>>, vector<128x128xbf16>
    %cst_11 = arith.constant dense<0.000000e+00> : vector<32x128xf32>
    %9 = tpu.matmul %5, %8, %cst_11 {dimension_numbers = #tpu.dot_dimension_numbers<[1], [0], [0], [1], [0, 0, 1, 1], [], []>} : vector<32x128xbf16>, vector<128x128xbf16>, vector<32x128xf32> -> vector<32x128xf32>
    %10 = arith.addf %7, %9 : vector<32x128xf32>
    %cst_12 = arith.constant dense<0.000000e+00> : vector<32xf32>
    %11 = vector.multi_reduction <add>, %10, %cst_12 [1] : vector<32x128xf32> to vector<32xf32>
    %12 = vector.shape_cast %11 : vector<32xf32> to vector<32x1xf32>
    %13 = arith.mulf %10, %10 : vector<32x128xf32>
    %cst_13 = arith.constant dense<0.000000e+00> : vector<32xf32>
    %14 = vector.multi_reduction <add>, %13, %cst_13 [1] : vector<32x128xf32> to vector<32xf32>
    %15 = vector.shape_cast %14 : vector<32xf32> to vector<32x1xf32>
    %cst_14 = arith.constant 7.812500e-03 : f32
    %16 = vector.broadcast %cst_14 : f32 to vector<32x1xf32>
    %17 = arith.mulf %12, %16 : vector<32x1xf32>
    %cst_15 = arith.constant 7.812500e-03 : f32
    %18 = vector.broadcast %cst_15 : f32 to vector<32x1xf32>
    %19 = arith.mulf %15, %18 : vector<32x1xf32>
    %20 = arith.mulf %17, %17 : vector<32x1xf32>
    %21 = arith.subf %19, %20 : vector<32x1xf32>
    %22 = vector.broadcast %17 : vector<32x1xf32> to vector<32x128xf32>
    %23 = arith.subf %10, %22 : vector<32x128xf32>
    %cst_16 = arith.constant 9.99999974E-6 : f32
    %24 = vector.broadcast %cst_16 : f32 to vector<32x1xf32>
    %25 = arith.addf %21, %24 : vector<32x1xf32>
    %26 = math.rsqrt %25 : vector<32x1xf32>
    %27 = vector.broadcast %26 : vector<32x1xf32> to vector<32x128xf32>
    %28 = arith.mulf %23, %27 : vector<32x128xf32>
    %c0_17 = arith.constant 0 : index
    %c0_18 = arith.constant 0 : index
    %29 = vector.load %arg5[%c0_17, %c0_18] : memref<1x128xf32, #tpu.memory_space<vmem>>, vector<1x128xf32>
    %30 = vector.broadcast %29 : vector<1x128xf32> to vector<32x128xf32>
    %31 = arith.mulf %28, %30 : vector<32x128xf32>
    %c0_19 = arith.constant 0 : index
    %c0_20 = arith.constant 0 : index
    %32 = vector.load %arg6[%c0_19, %c0_20] : memref<1x128xf32, #tpu.memory_space<vmem>>, vector<1x128xf32>
    %33 = vector.broadcast %32 : vector<1x128xf32> to vector<32x128xf32>
    %34 = arith.addf %31, %33 : vector<32x128xf32>
    %35 = vector.shape_cast %34 : vector<32x128xf32> to vector<4x8x128xf32>
    %c0_21 = arith.constant 0 : index
    %c0_22 = arith.constant 0 : index
    %c0_23 = arith.constant 0 : index
    %36 = vector.load %arg7[%c0_21, %c0_22, %c0_23] : memref<4x8x128xf32, #tpu.memory_space<vmem>>, vector<4x8x128xf32>
    tpu.vector_store %arg7[%c0_21, %c0_22, %c0_23], %35 {strides = array<i32>} : memref<4x8x128xf32, #tpu.memory_space<vmem>>, vector<4x8x128xf32>,
    return
  }
  func.func @transform_0(%arg0: i32) -> (i32, i32, i32, i32) {
    %c0_i32 = arith.constant 0 : i32
    %c0_i32_0 = arith.constant 0 : i32
    %c0_i32_1 = arith.constant 0 : i32
    %c0_i32_2 = arith.constant 0 : i32
    return %arg0, %c0_i32, %c0_i32_0, %c0_i32_1 : i32, i32, i32, i32
  }
  func.func @transform_1(%arg0: i32) -> (i32, i32, i32, i32) {
    %c1_i32 = arith.constant 1 : i32
    %c0_i32 = arith.constant 0 : i32
    %c0_i32_0 = arith.constant 0 : i32
    %c0_i32_1 = arith.constant 0 : i32
    return %arg0, %c1_i32, %c0_i32, %c0_i32_0 : i32, i32, i32, i32
  }
  func.func @transform_2(%arg0: i32) -> (i32, i32) {
    %c0_i32 = arith.constant 0 : i32
    %c0_i32_0 = arith.constant 0 : i32
    %c0_i32_1 = arith.constant 0 : i32
    return %c0_i32, %c0_i32_0 : i32, i32
  }
  func.func @transform_3(%arg0: i32) -> (i32, i32) {
    %c0_i32 = arith.constant 0 : i32
    %c0_i32_0 = arith.constant 0 : i32
    %c0_i32_1 = arith.constant 0 : i32
    return %c0_i32, %c0_i32_0 : i32, i32
  }
  func.func @transform_4(%arg0: i32) -> (i32, i32) {
    %c0_i32 = arith.constant 0 : i32
    %c0_i32_0 = arith.constant 0 : i32
    %c0_i32_1 = arith.constant 0 : i32
    return %c0_i32, %c0_i32_0 : i32, i32
  }
  func.func @transform_5(%arg0: i32) -> (i32, i32) {
    %c0_i32 = arith.constant 0 : i32
    %c0_i32_0 = arith.constant 0 : i32
    %c0_i32_1 = arith.constant 0 : i32
    return %c0_i32, %c0_i32_0 : i32, i32
  }
  func.func @transform_6(%arg0: i32) -> (i32, i32, i32) {
    %c0_i32 = arith.constant 0 : i32
    %c0_i32_0 = arith.constant 0 : i32
    %c0_i32_1 = arith.constant 0 : i32
    return %arg0, %c0_i32, %c0_i32_0 : i32, i32, i32
  }
}

</mosaic_0001>

<bundles_post_ra>
// kernel: tpu_custom_call.1
= control target key start
LH: loop header
LB: loop body
LE: loop exit
PB: predicated region body
PF: predicated region fallthrough
CT: control target
= control target key end

     0   :  { %s1586_s0 = inlined_call_operand.hbm [shape: bf16[16,2,8,128], index: 0, kind: input, shape index: {}]   ;;  %s1587_s1 = inlined_call_operand.hbm [shape: bf16[16,2,8,128], index: 1, kind: input, shape index: {}]   ;;  %s1588_s2 = inlined_call_operand.hbm [shape: bf16[128,128], index: 2, kind: input, shape index: {}]   ;;  %s1589_s3 = inlined_call_operand.hbm [shape: bf16[128,128], index: 3, kind: input, shape index: {}]   ;;  %s1590_s4 = inlined_call_operand.vmem [shape: f32[1,128], index: 4, kind: input, shape index: {}]   ;;  %s1591_s5 = inlined_call_operand.vmem [shape: f32[1,128], index: 5, kind: input, shape index: {}]   ;;  %s1592_s6 = inlined_call_operand.hbm [shape: f32[16,8,128], index: 6, kind: output, shape index: {}]  }
   0x1   :  { %1602 = sst [smem:[#allocation18_spill]] %s1586_s0 }
   0x2   :  { %1603 = sst [smem:[#allocation19_spill]] %s1588_s2 }
   0x3   :  { %1604 = sst [smem:[#allocation20_spill]] %s1589_s3 }
   0x4   :  { %11 = vsyncpa [#allocation3], 0 }
   0x5   :  { %13 = vsyncpa [#allocation3 + $0x1], 0 }
   0x6   :  { %14 = vsyncpa [#allocation6], 0 }
   0x7   :  { %16 = vsyncpa [#allocation6 + $0x1], 0 }
   0x8   :  { %17 = vsyncpa [#allocation9], 0 }
   0x9   :  { %18 = vsyncpa [#allocation4], 0 }
   0xa   :  { %20 = vsyncpa [#allocation4 + $0x1], 0  ;;  %s1273_s21 = smov 0   ;;  %s1275_s22 = smov 0  }
   0xb   :  { %s1277_s23 = smov 0   ;;  %s1279_s24 = smov 0  }
   0xc LB: > { %1605 = sst [smem:[#allocation16_spill]] %s1222_s23  ;;  %s1294_s25 = sadd.s32 4294967295, %s1226_s24   ;;  %s1226_s24 = sphi %s1279_s24, %s1634_s24   ;;  %s1222_s23 = sphi %s1277_s23, %s1631_s23   ;;  %s1218_s22 = sphi %s1275_s22, %s1633_s22   ;;  %s1214_s21 = sphi %s1273_s21, %s1632_s21  }
   0xd   : > { %s813_s26 = sadd.s32 4294967294, %s1226_s24   ;;  %s1298_s27 = sadd.s32 1, %s1226_s24  }
   0xe   : > { %s33_s28 = sadd.s32 1, %s1222_s23  ;;  %s30_s29 = ssub.s32 %s1226_s24, %s1298_s27 }
   0xf   : > { %p40_p0 = scmp.ne.s32.totalorder %s1222_s23, %s1218_s22  ;;  %p31_p1 = scmp.eq.s32.totalorder %s30_s29, 0 }
  0x10   : > { %p41_p2 = scmp.eq.s32.totalorder %s1226_s24, 0  ;;  %p46_p3 = scmp.ne.s32.totalorder %s1218_s22, %s1214_s21 }
  0x11   : > { %p1593_p4 = scmp.eq.s32.totalorder %s1294_s25, 0  ;;  %p180_p7 = scmp.eq.s32.totalorder %s1294_s25, 3 }
  0x12   : > { %s1310_s30 = scalar_select %p31_p1, %s1222_s23, %s33_s28  }
  0x13   : > { %p1312_p5 = por %p41_p2, %p40_p0  ;;  %p1318_p6 = por %p1593_p4, %p46_p3 }
  0x14   : > { %1606 = sst [smem:[#allocation17_spill]] %s1310_s30  ;;  %p186_p8 = scmp.eq.s32.totalorder %s813_s26, 3 }
  0x15   : > { %s1607_s7 = scalar_select %p1312_p5, 1, 0 }
  0x16   : > { %s1608_s8 = scalar_select %p1318_p6, 1, 0 }
  0x17   : > { %p814_p9 = scmp.ge.s32.totalorder %s1226_s24, 1  ;;  %p193_p10 = scmp.lt.s32.totalorder %s1226_s24, 5 }
  0x18   : > { %p1325_p11 = por %p180_p7, %p40_p0  ;;  %p1329_p12 = por %p186_p8, %p46_p3 }
  0x19   : > { %p1333_p13 = pnand %p814_p9, %p193_p10  ;;  %s1228_s12 = smov [#allocation7]  }
  0x1a   : > { %s1609_s9 = scalar_select %p1325_p11, 1, 0 }
  0x1b   : > { %s1610_s10 = scalar_select %p1329_p12, 1, 0 }
  0x1c   : > { %s1611_s11 = scalar_select %p1333_p13, 1, 0 }
  0x1d   : > { %p940_p1 = pneg %p1333_p13  ;;  %s205_s13 = sshll.u32 %s1228_s12, 4  ;;  %s206_s13 = int_to_ptr.vmem [resolvable:$true] %s205_s13 }
  0x1e   : > { %s1229_s15 = smov [#allocation8]   ;;  %s1613_s2 = sld [smem:[#allocation19_spill]] }
  0x1f   : > { %p1341_p2 = pnand %p940_p1, %p1593_p4  ;;  %s218_s16 = sshll.u32 %s1229_s15, 4  ;;  %s219_s16 = int_to_ptr.vmem [resolvable:$true] %s218_s16 }
  0x21   : > { %p1033_p7 = pneg %p1341_p2 }
  0x24   : > { %s1031_s19 = scalar_lea.hbm %s1613_s2, 1024 }
  0x25   : > { %p1032_p3 = scmp.ne.s32.totalorder %s1613_s2, %s1031_s19  ;;  %p1038_p10 = scmp.lt.u32.totalorder %s1031_s19, %s1613_s2 }
  0x27   : > { %p1034_p8 = pnand %p1033_p7, %p1032_p3 }
  0x29   : > { %p1035_p9 = pneg %p1034_p8 }
  0x2b   : > { %p1040_p1 = pnand %p1038_p10, %p1035_p9 }
  0x2d   : > { %1043 = shalt.err (!%p1040_p1)
}
  0x2e   : > { %s1044_s12 = scalar_lea.vmem %s206_s13, 1024  ;;  %p1052_p11 = scmp.lt.s32.totalorder %s206_s13, %s206_s13 }
  0x2f   : > { %p1045_p4 = scmp.ne.s32.totalorder %s206_s13, %s1044_s12  ;;  %p1053_p6 = scmp.lt.s32.totalorder %s1044_s12, %s1044_s12 }
  0x31   : > { %p1047_p0 = pnand %p1045_p4, %p1033_p7  ;;  %p1054_p13 = por %p1053_p6, %p1052_p11 }
  0x33   : > { %p1048_p12 = pneg %p1047_p0 }
  0x35   : > { %p1055_p5 = pnand %p1054_p13, %p1048_p12 }
  0x37   : > { %1058 = shalt.err (!%p1055_p5)
}
  0x38   : > { %s1599_s15 = smov 64   ;;  %s1231_s17 = smov 4  }
  0x39   : > { %943 = dma.hbm_to_vmem [thread:$0]  (!%p1341_p2), %s1613_s2, 1024, %s206_s13, [#allocation6], %s1599_s15, %s1599_s15, %s1231_s17  }
  0x3a   : > { %p1614_p4 = scmp.ne.s32.totalorder %s1607_s7, 0  ;;  %p1615_p0 = scmp.lt.s32.totalorder %s1226_s24, 4 }
  0x3b   : > { %s1617_s3 = sld [smem:[#allocation20_spill]] }
  0x3c   : > { %p1375_p3 = pnand %p1615_p0, %p1614_p4 }
  0x3e   : > { %s1616_s20 = scalar_select %p1375_p3, 1, 0 }
  0x41   : > { %s1059_s29 = scalar_lea.hbm %s1617_s3, 1024 }
  0x42   : > { %p1060_p5 = scmp.ne.s32.totalorder %s1617_s3, %s1059_s29  ;;  %p1066_p12 = scmp.lt.u32.totalorder %s1059_s29, %s1617_s3 }
  0x44   : > { %p1062_p6 = pnand %p1060_p5, %p1033_p7 }
  0x46   : > { %p1063_p11 = pneg %p1062_p6 }
  0x48   : > { %p1068_p13 = pnand %p1066_p12, %p1063_p11 }
  0x4a   : > { %1071 = shalt.err (!%p1068_p13)
}
  0x4b   : > { %s1072_s18 = scalar_lea.vmem %s219_s16, 1024  ;;  %p1080_p1 = scmp.lt.s32.totalorder %s219_s16, %s219_s16 }
  0x4c   : > { %p1073_p8 = scmp.ne.s32.totalorder %s219_s16, %s1072_s18  ;;  %p1081_p4 = scmp.lt.s32.totalorder %s1072_s18, %s1072_s18 }
  0x4e   : > { %p1075_p9 = pnand %p1073_p8, %p1033_p7  ;;  %p1082_p0 = por %p1081_p4, %p1080_p1 }
  0x50   : > { %p1076_p10 = pneg %p1075_p9 }
  0x52   : > { %p1083_p3 = pnand %p1082_p0, %p1076_p10 }
  0x54   : > { %1086 = shalt.err (!%p1083_p3)
}
  0x55   : > { %946 = dma.hbm_to_vmem [thread:$0]  (!%p1341_p2), %s1617_s3, 1024, %s219_s16, [#allocation9], %s1599_s15, %s1599_s15, %s1231_s17  }
  0x56   : > { %s238_s26 = sand.u32 1, %s1222_s23   ;;  %s1598_s29 = sshll.u32 %s1226_s24, 9 }
  0x57   : > { %s1403_s28 = sshll.u32 %s238_s26, 4  ;;  %s1618_s0 = sld [smem:[#allocation18_spill]] }
  0x58   : > { %s242_s7 = scalar_lea.vmem [#allocation2], %s1403_s28  ;;  %s1416_s16 = scalar_lea.sflag [#allocation3], %s238_s26 }
  0x59   : > { %s250_s18 = sshll.u32 %s242_s7, 4  ;;  %p1619_p7 = scmp.ne.s32.totalorder %s1616_s20, 0  ;;  %s1414_s18 = int_to_ptr.vmem [resolvable:$true] %s250_s18 }
  0x5b   : > { %p1089_p3 = pneg %p1619_p7 }
  0x5d   : > { %s1411_s13 = scalar_lea.hbm %s1618_s0, %s1598_s29  ;;  %s1092_s14 = scalar_lea.hbm %s1618_s0, 2048 }
  0x5e   : > { %s1087_s30 = scalar_lea.hbm %s1411_s13, 256  ;;  %p1093_p11 = scmp.lt.u32.totalorder %s1411_s13, %s1618_s0 }
  0x5f   : > { %p1088_p2 = scmp.ne.s32.totalorder %s1411_s13, %s1087_s30  ;;  %p1094_p12 = scmp.lt.u32.totalorder %s1092_s14, %s1087_s30 }
  0x60   : > { %p1096_p8 = scmp.lt.u32.totalorder %s1087_s30, %s1411_s13 }
  0x61   : > { %p1090_p5 = pnand %p1089_p3, %p1088_p2  ;;  %p1095_p13 = por %p1094_p12, %p1093_p11 }
  0x63   : > { %p1091_p6 = pneg %p1090_p5  ;;  %p1097_p9 = por %p1096_p8, %p1095_p13 }
  0x65   : > { %p1098_p10 = pnand %p1097_p9, %p1091_p6 }
  0x67   : > { %1101 = shalt.err (!%p1098_p10)
}
  0x68   : > { %s1102_s26 = scalar_lea.vmem %s1414_s18, 256  ;;  %s1232_s7 = smov [#allocation2]  }
  0x69   : > { %p1103_p1 = scmp.ne.s32.totalorder %s1414_s18, %s1102_s26  ;;  %s1107_s19 = sshll.u32 %s1232_s7, 4  ;;  %s1108_s19 = int_to_ptr.vmem [resolvable:$false] %s1107_s19 }
  0x6a   : > { %s1109_s15 = scalar_lea.vmem %s1108_s19, 512  ;;  %p1110_p2 = scmp.lt.s32.totalorder %s1414_s18, %s1108_s19 }
  0x6b   : > { %p1105_p4 = pnand %p1103_p1, %p1089_p3  ;;  %p1111_p5 = scmp.lt.s32.totalorder %s1109_s15, %s1102_s26 }
  0x6d   : > { %p1106_p0 = pneg %p1105_p4  ;;  %p1112_p11 = por %p1111_p5, %p1110_p2 }
  0x6f   : > { %p1113_p12 = pnand %p1112_p11, %p1106_p0 }
  0x71   : > { %1116 = shalt.err (!%p1113_p12)
}
  0x72   : > { %s1233_s29 = smov 128   ;;  %s1620_s30 = smov 64  }
  0x73   : > { %950 = dma.hbm_to_vmem [thread:$0]  (!%p1619_p7), %s1411_s13, 256, %s1414_s18, %s1416_s16, %s1233_s29, %s1620_s30, %s1231_s17  }
  0x74   : > { %s1621_s12 = sshll.u32 %s1226_s24, 9  ;;  %s264_s15 = scalar_lea.vmem [#allocation5], %s1403_s28 }
  0x75   : > { %s737_s7 = scalar_lea.hbm %s1587_s1, %s1621_s12  ;;  %s273_s0 = sshll.u32 %s264_s15, 4  ;;  %s1455_s0 = int_to_ptr.vmem [resolvable:$true] %s273_s0 }
  0x76   : > { %s1452_s19 = scalar_lea.hbm %s737_s7, 64  ;;  %s260_s2 = sand.u32 1, %s1226_s24  }
  0x77   : > { %s1458_s3 = scalar_lea.sflag [#allocation6], %s260_s2  ;;  %s1147_s23 = scalar_lea.hbm %s737_s7, 320 }
  0x78   : > { %p1118_p6 = scmp.ne.s32.totalorder %s1452_s19, %s1147_s23  ;;  %s1122_s16 = scalar_lea.hbm %s1587_s1, 2048 }
  0x79   : > { %p1123_p9 = scmp.lt.u32.totalorder %s1452_s19, %s1587_s1  ;;  %p1124_p10 = scmp.lt.u32.totalorder %s1122_s16, %s1147_s23 }
  0x7a   : > { %p1120_p13 = pnand %p1118_p6, %p1089_p3  ;;  %p1126_p4 = scmp.lt.u32.totalorder %s1147_s23, %s1452_s19 }
  0x7b   : > { %p1125_p1 = por %p1124_p10, %p1123_p9 }
  0x7c   : > { %p1121_p8 = pneg %p1120_p13 }
  0x7d   : > { %p1127_p0 = por %p1126_p4, %p1125_p1 }
  0x7f   : > { %p1128_p2 = pnand %p1127_p0, %p1121_p8 }
  0x81   : > { %1131 = shalt.err (!%p1128_p2)
}
  0x82   : > { %s1132_s2 = scalar_lea.vmem %s1455_s0, 256  ;;  %s1234_s28 = smov [#allocation5]  }
  0x83   : > { %p1133_p5 = scmp.ne.s32.totalorder %s1455_s0, %s1132_s2  ;;  %s1137_s26 = sshll.u32 %s1234_s28, 4  ;;  %s1138_s26 = int_to_ptr.vmem [resolvable:$false] %s1137_s26 }
  0x84   : > { %s1139_s7 = scalar_lea.vmem %s1138_s26, 512  ;;  %p1140_p6 = scmp.lt.s32.totalorder %s1455_s0, %s1138_s26 }
  0x85   : > { %p1135_p11 = pnand %p1133_p5, %p1089_p3  ;;  %p1141_p13 = scmp.lt.s32.totalorder %s1139_s7, %s1132_s2 }
  0x87   : > { %p1136_p12 = pneg %p1135_p11  ;;  %p1142_p9 = por %p1141_p13, %p1140_p6 }
  0x89   : > { %p1143_p10 = pnand %p1142_p9, %p1136_p12 }
  0x8b   : > { %1146 = shalt.err (!%p1143_p10)
}
  0x8c   : > { %953 = dma.hbm_to_vmem [thread:$0]  (!%p1619_p7), %s1452_s19, 256, %s1455_s0, %s1458_s3, %s1233_s29, %s1620_s30, %s1231_s17  }
  0x8d   : > { %p1622_p3 = scmp.ne.s32.totalorder %s1611_s11, 0 }
  0x8e   : > { %s1489_s23 = sand.u32 (!%p1622_p3), 1, %s1218_s22   ;;  %p1623_p8 = scmp.ne.s32.totalorder (!%p1622_p3), %s1608_s8, 0 }
  0x8f   : > { %285 = sbr.rel (%p1622_p3) target bundleno = 602 (0x25a), region = 44  ;;  %s826_s15 = sshll.u32 (!%p1622_p3), %s1489_s23, 4 }
  0x90   : > { %s288_s13 = scalar_lea.sflag (!%p1622_p3), [#allocation3], %s1489_s23  ;;  %s1493_s18 = scalar_lea.vmem (!%p1622_p3), [#allocation2], %s826_s15 }
  0x96   : > { %1193 = dma.done.wait (%p1623_p8), %s288_s13, 256  }
  0x97   : > { %1195 = vsyncadd (%p1623_p8), %s288_s13, 4294967040  ;;  %s296_s0 = sand.u32 1, %s1294_s25   ;;  %s1500_s11 = scalar_lea.vmem [#allocation5], %s826_s15 }
  0x98   : > { %s297_s3 = scalar_lea.sflag [#allocation6], %s296_s0 }
  0x99   : > { %1197 = dma.done.wait (%p1623_p8), %s297_s3, 256  }
  0x9a   : > { %1199 = vsyncadd (%p1623_p8), %s297_s3, 4294967040  ;;  %p1624_p7 = scmp.eq.s32.totalorder %s1294_s25, 0 }
  0x9c   : > { %1201 = dma.done.wait (%p1624_p7), [#allocation6], 1024   ;;  %p1625_p1 = pmov %p1624_p7 }
  0x9e   : > { %1203 = vsyncadd (%p1625_p1), [#allocation6], 4294966272  ;;  %p1626_p4 = pmov %p1625_p1 }
  0x9f   : > { %p1627_p0 = pmov %p1625_p1 }
  0xa0   : > { %1205 = dma.done.wait (%p1626_p4), [#allocation9], 1024  }
  0xa1   : > { %1207 = vsyncadd (%p1627_p0), [#allocation9], 4294966272  ;;  %v1003_v0 = vld [vmem:[#allocation8] sm:$0xff]   ;;  %v1005_v2 = vld [vmem:[#allocation8 + $0x8] sm:$0xff]   ;;  %s830_s20 = sshll.u32 %s1489_s23, 5  ;;  %s861_s19 = sshll.u32 %s1294_s25, 9 }
  0xa2   : > { %v1004_v1 = vld [vmem:[#allocation7] sm:$0xff]   ;;  %882 = vmatprep.subr.bf16.mxu1 %v1003_v0  ;;  %v1006_v3 = vld [vmem:[#allocation7 + $0x8] sm:$0xff]   ;;  %v1007_v4 = vld [vmem:[#allocation8 + $0x10] sm:$0xff]   ;;  %s341_s16 = scalar_lea.vmem [#allocation10], %s830_s20  ;;  %s1541_s28 = scalar_lea.hbm %s1592_s6, %s861_s19 }
  0xa3   : > { %902 = vmatprep.subr.bf16.mxu0 %v1004_v1  ;;  %883 = vmatpush3.bf16.msra.mxu1 %v1003_v0  ;;  %v1008_v5 = vld [vmem:[#allocation7 + $0x10] sm:$0xff]   ;;  %v1009_v6 = vld [vmem:[#allocation8 + $0x18] sm:$0xff]   ;;  %v1011_v8 = vld [vmem:[#allocation8 + $0x20] sm:$0xff]   ;;  %s696_s12 = sshll.u32 %s341_s16, 4  ;;  %s683_s25 = scalar_lea.sflag [#allocation4], %s1489_s23  ;;  %s1543_s12 = int_to_ptr.vmem [resolvable:$true] %s696_s12 }
  0xa4   : > { %903 = vmatpush3.bf16.msra.mxu0 %v1004_v1  ;;  %884 = vmatprep.subr.bf16.mxu1 %v1005_v2  ;;  %v1010_v7 = vld [vmem:[#allocation7 + $0x18] sm:$0xff]   ;;  %v1012_v9 = vld [vmem:[#allocation7 + $0x20] sm:$0xff]   ;;  %v1013_v10 = vld [vmem:[#allocation8 + $0x28] sm:$0xff]   ;;  %s1148_s26 = scalar_lea.vmem %s1543_s12, 512  ;;  %p1628_p5 = scmp.ne.s32.totalorder %s1609_s9, 0 }
  0xa5   : > { %904 = vmatprep.subr.bf16.mxu0 %v1006_v3  ;;  %v1014_v11 = vld [vmem:[#allocation7 + $0x28] sm:$0xff]   ;;  %v1019_v12 = vld [vmem:[%s1500_s11] sm:$0xff]   ;;  %v1017_v16 = vld [vmem:[#allocation8 + $0x38] sm:$0xff]   ;;  %p1149_p2 = scmp.ne.s32.totalorder %s1543_s12, %s1148_s26  ;;  %s1235_s7 = smov [#allocation10]  }
  0xa6   : > { %v1020_v13 = vld [vmem:[%s1493_s18] sm:$0xff]   ;;  %898 = vmatprep.mubr.bf16.mxu1 %v1019_v12  ;;  %v1018_v17 = vld [vmem:[#allocation7 + $0x38] sm:$0xff]   ;;  %s1152_s15 = sshll.u32 %s1235_s7, 4  ;;  %s1153_s15 = int_to_ptr.vmem [resolvable:$false] %s1152_s15 }
  0xa7   : > { %885 = vmatpush3.bf16.msra.mxu1 %v1005_v2  ;;  %918 = vmatprep.mubr.bf16.mxu0 %v1020_v13  ;;  %v1015_v14 = vld [vmem:[#allocation8 + $0x30] sm:$0xff]   ;;  %v1021_v18 = vld [vmem:[%s1500_s11 + $0x8] sm:$0xff]   ;;  %p1150_p11 = pnand %p1149_p2, %p1628_p5  ;;  %s1154_s13 = scalar_lea.vmem %s1153_s15, 1024 }
  0xa8   : > { %905 = vmatpush3.bf16.msra.mxu0 %v1006_v3  ;;  %886 = vmatprep.subr.bf16.mxu1 %v1007_v4  ;;  %v1016_v15 = vld [vmem:[#allocation7 + $0x30] sm:$0xff]   ;;  %v1022_v19 = vld [vmem:[%s1493_s18 + $0x8] sm:$0xff]   ;;  %v851_v3 = vld [vmem:[%s1590_s4] ss:$0 sm:$0xff]  ;;  %p1155_p6 = scmp.lt.s32.totalorder %s1543_s12, %s1153_s15  ;;  %p1156_p13 = scmp.lt.s32.totalorder %s1154_s13, %s1148_s26 }
  0xa9   : > { %906 = vmatprep.subr.bf16.mxu0 %v1008_v5  ;;  %p1151_p12 = pneg %p1150_p11 }
  0xaa   : > { %p1157_p9 = por %p1156_p13, %p1155_p6 }
  0xab   : > { %887 = vmatpush3.bf16.msra.mxu1 %v1007_v4 }
  0xac   : > { %907 = vmatpush3.bf16.msra.mxu0 %v1008_v5  ;;  %888 = vmatprep.subr.bf16.mxu1 %v1009_v6  ;;  %p1158_p10 = pnand %p1157_p9, %p1151_p12 }
  0xad   : > { %908 = vmatprep.subr.bf16.mxu0 %v1010_v7 }
  0xaf   : > { %889 = vmatpush3.bf16.msra.mxu1 %v1009_v6  ;;  %v852_v6 = vld [vmem:[%s1591_s5] ss:$0 sm:$0xff] }
  0xb0   : > { %909 = vmatpush3.bf16.msra.mxu0 %v1010_v7  ;;  %890 = vmatprep.subr.bf16.mxu1 %v1011_v8 }
  0xb1   : > { %910 = vmatprep.subr.bf16.mxu0 %v1012_v9 }
  0xb3   : > { %891 = vmatpush3.bf16.msra.mxu1 %v1011_v8 }
  0xb4   : > { %911 = vmatpush3.bf16.msra.mxu0 %v1012_v9  ;;  %892 = vmatprep.subr.bf16.mxu1 %v1013_v10 }
  0xb5   : > { %912 = vmatprep.subr.bf16.mxu0 %v1014_v11 }
  0xb7   : > { %893 = vmatpush3.bf16.msra.mxu1 %v1013_v10 }
  0xb8   : > { %913 = vmatpush3.bf16.msra.mxu0 %v1014_v11  ;;  %894 = vmatprep.subr.bf16.mxu1 %v1015_v14 }
  0xb9   : > { %914 = vmatprep.subr.bf16.mxu0 %v1016_v15 }
  0xbb   : > { %895 = vmatpush3.bf16.msra.mxu1 %v1015_v14 }
  0xbc   : > { %915 = vmatpush3.bf16.msra.mxu0 %v1016_v15  ;;  %896 = vmatprep.subr.bf16.mxu1 %v1017_v16 }
  0xbd   : > { %916 = vmatprep.subr.bf16.mxu0 %v1018_v17 }
  0xbf   : > { %897 = vmatpush3.bf16.msra.mxu1 %v1017_v16 }
  0xc0   : > { %917 = vmatpush3.bf16.msra.mxu0 %v1018_v17 }
  0xc2   : > { %899 = vmatmul.mubr.bf16.vlgmr.msra.gmra.mrb[0].mxu1 %v1021_v18 }
  0xc3   : > { %919 = vmatmul.mubr.bf16.vlgmr.msra.gmra.mrb[0].mxu0 %v1022_v19 }
 0x195   : > { %v900_v20 = vpop.f32.mrb[0].mxu1 }
 0x196   : > { %v920_v21 = vpop.f32.mrb[0].mxu0  ;;  %v480_v22 = vpop.f32.mrb[1].mxu1 }
 0x197   : > { %v1518_v23 = vadd.f32 %v920_v21, %v900_v20  ;;  %v589_v24 = vpop.f32.mrb[1].mxu0  ;;  %v901_v25 = vpop.f32.mrb[2].mxu1 }
 0x198   : > { %v590_v26 = vadd.f32 %v589_v24, %v480_v22  ;;  %v921_v27 = vpop.f32.mrb[2].mxu0  ;;  %v483_v28 = vpop.f32.mrb[3].mxu1 }
 0x199   : > { %v1520_v29 = vadd.f32 %v921_v27, %v901_v25  ;;  %608 = vadd.xlane.f32.xlu1 %v1518_v23  ;;  %v592_v30 = vpop.f32.mrb[3].mxu0  ;;  %v614_v35 = vmul.f32 %v1518_v23, %v1518_v23 }
 0x19a   : > { %v593_v31 = vadd.f32 %v592_v30, %v483_v28  ;;  %604 = vadd.xlane.f32.xlu0 %v590_v26  ;;  %v612_v33 = vmul.f32 %v590_v26, %v590_v26 }
 0x19b   : > { %v615_v34 = vmul.f32 %v1520_v29, %v1520_v29 }
 0x19c   : > { %v613_v32 = vmul.f32 %v593_v31, %v593_v31 }
 0x19d   : > { %610 = vadd.xlane.f32.xlu1 %v1520_v29 }
 0x19e   : > { %606 = vadd.xlane.f32.xlu0 %v593_v31 }
 0x1a1   : > { %618 = vadd.xlane.f32.xlu1 %v613_v32 }
 0x1a2   : > { %616 = vadd.xlane.f32.xlu0 %v612_v33 }
 0x1a5   : > { %622 = vadd.xlane.f32.xlu1 %v615_v34 }
 0x1a6   : > { %620 = vadd.xlane.f32.xlu0 %v614_v35 }
 0x226   : > { %v609_v36 = vpop.xlane.xlu1 %608 }
 0x227   : > { %v605_v37 = vpop.xlane.xlu0 %604  ;;  %v626_v47 = vmul.f32 0.0078125, %v609_v36 }
 0x228   : > { %v624_v40 = vmul.f32 0.0078125, %v605_v37 }
 0x229   : > { %v634_v57 = vmul.f32 %v626_v47, %v626_v47  ;;  %v642_v11 = vsub.f32 %v1518_v23, %v626_v47 }
 0x22a   : > { %v611_v38 = vpop.xlane.xlu1 %610  ;;  %v632_v48 = vmul.f32 %v624_v40, %v624_v40  ;;  %v640_v2 = vsub.f32 %v590_v26, %v624_v40 }
 0x22b   : > { %v607_v39 = vpop.xlane.xlu0 %606  ;;  %v627_v44 = vmul.f32 0.0078125, %v611_v38 }
 0x22c   : > { %v625_v41 = vmul.f32 0.0078125, %v607_v39 }
 0x22d   : > { %v635_v53 = vmul.f32 %v627_v44, %v627_v44  ;;  %v643_v8 = vsub.f32 %v1520_v29, %v627_v44 }
 0x22e   : > { %v633_v42 = vmul.f32 %v625_v41, %v625_v41  ;;  %v619_v43 = vpop.xlane.xlu1 %618  ;;  %v641_v0 = vsub.f32 %v593_v31, %v625_v41 }
 0x22f   : > { %v629_v45 = vmul.f32 0.0078125, %v619_v43  ;;  %v617_v46 = vpop.xlane.xlu0 %616 }
 0x230   : > { %v628_v49 = vmul.f32 0.0078125, %v617_v46 }
 0x231   : > { %v637_v50 = vsub.f32 %v629_v45, %v633_v42 }
 0x232   : > { %v636_v51 = vsub.f32 %v628_v49, %v632_v48  ;;  %v623_v52 = vpop.xlane.xlu1 %622 }
 0x233   : > { %v645_v54 = vadd.f32 1e-05, %v637_v50  ;;  %v631_v55 = vmul.f32 0.0078125, %v623_v52  ;;  %v621_v56 = vpop.xlane.xlu0 %620 }
 0x234   : > { %v644_v58 = vadd.f32 1e-05, %v636_v51  ;;  %v630_v59 = vmul.f32 0.0078125, %v621_v56 }
 0x235   : > { %1023 = vrsqrt.f32 %v645_v54  ;;  %v639_v60 = vsub.f32 %v631_v55, %v635_v53 }
 0x236   : > { %1025 = vrsqrt.f32 %v644_v58  ;;  %v638_v61 = vsub.f32 %v630_v59, %v634_v57 }
 0x237   : > { %v647_v62 = vadd.f32 1e-05, %v639_v60 }
 0x238   : > { %v646_v63 = vadd.f32 1e-05, %v638_v61 }
 0x239   : > { %1027 = vrsqrt.f32 %v647_v62 }
 0x23a   : > { %1029 = vrsqrt.f32 %v646_v63 }
 0x23f   : > { %v1024_v1 = vpop.eup %1023 }
 0x240   : > { %v1026_v4 = vpop.eup %1025  ;;  %v653_v5 = vmul.f32 %v1024_v1, %v641_v0 }
 0x241   : > { %v652_v7 = vmul.f32 %v1026_v4, %v640_v2 }
 0x242   : > { %v664_v9 = vmul.f32 %v851_v3, %v653_v5 }
 0x243   : > { %v1028_v10 = vpop.eup %1027  ;;  %v663_v12 = vmul.f32 %v851_v3, %v652_v7 }
 0x244   : > { %v1030_v13 = vpop.eup %1029  ;;  %v675_v14 = vadd.f32 %v852_v6, %v664_v9  ;;  %v655_v15 = vmul.f32 %v1028_v10, %v643_v8 }
 0x245   : > { %v674_v16 = vadd.f32 %v852_v6, %v663_v12  ;;  %v654_v17 = vmul.f32 %v1030_v13, %v642_v11 }
 0x246   : > { %679 = vst [vmem:[%s341_s16 + $0x8] sm:$0xff] %v675_v14  ;;  %v666_v18 = vmul.f32 %v851_v3, %v655_v15 }
 0x247   : > { %678 = vst [vmem:[%s341_s16] sm:$0xff] %v674_v16  ;;  %v665_v19 = vmul.f32 %v851_v3, %v654_v17 }
 0x248   : > { %v677_v20 = vadd.f32 %v852_v6, %v666_v18 }
 0x249   : > { %v676_v21 = vadd.f32 %v852_v6, %v665_v19 }
 0x24a   : > { %681 = vst [vmem:[%s341_s16 + $0x18] sm:$0xff] %v677_v20 }
 0x24b   : > { %680 = vst [vmem:[%s341_s16 + $0x10] sm:$0xff] %v676_v21 }
 0x24c   : > { %1161 = shalt.err (!%p1158_p10)
}
 0x24d   : > { %s1162_s18 = scalar_lea.hbm %s1541_s28, 512  ;;  %s1166_s11 = scalar_lea.hbm %s1592_s6, 2048 }
 0x24e   : > { %p1163_p3 = scmp.ne.s32.totalorder %s1541_s28, %s1162_s18  ;;  %p1167_p1 = scmp.lt.u32.totalorder %s1541_s28, %s1592_s6 }
 0x24f   : > { %p1168_p4 = scmp.lt.u32.totalorder %s1166_s11, %s1162_s18  ;;  %p1170_p2 = scmp.lt.u32.totalorder %s1162_s18, %s1541_s28 }
 0x250   : > { %p1164_p8 = pnand %p1163_p3, %p1628_p5 }
 0x251   : > { %p1169_p0 = por %p1168_p4, %p1167_p1 }
 0x252   : > { %p1165_p7 = pneg %p1164_p8 }
 0x253   : > { %p1171_p11 = por %p1170_p2, %p1169_p0 }
 0x255   : > { %p1172_p12 = pnand %p1171_p11, %p1165_p7 }
 0x257   : > { %1175 = shalt.err (!%p1172_p12)
}
 0x258   : > { %s1236_s20 = smov 128   ;;  %s1237_s29 = smov 8  }
 0x259   : > { %938 = dma.vmem_to_hbm [thread:$0]  (%p1628_p5), %s1543_s12, 512, %s1541_s28, %s683_s25, %s1236_s20, %s1236_s20, %s1237_s29  }
 0x25a PF: > { %p963_p6 = scmp.ge.s32.totalorder %s1226_s24, 2  ;;  %s711_s30 = sand.u32 1, %s1214_s21  }
 0x25b   : > { %p1629_p13 = scmp.ne.s32.totalorder %s1610_s10, 0  ;;  %s712_s19 = scalar_lea.sflag [#allocation4], %s711_s30 }
 0x25d   : > { %p955_p9 = pnand %p963_p6, %p1629_p13 }
 0x25f   : > { %1209 = dma.done.wait (!%p955_p9), %s712_s19, 512  }
 0x260   : > { %1211 = vsyncadd (!%p955_p9), %s712_s19, 4294966784  ;;  %s1630_s16 = sld [smem:[#allocation16_spill]]  ;;  %s1631_s23 = sld [smem:[#allocation17_spill]] }
 0x261   : > { %p23_p10 = scmp.ge.s32.totalorder %s1298_s27, 6   ;;  %s1632_s21 = smov %s1218_s22 }
 0x262   : > { %s1634_s24 = smov %s1298_s27 }
 0x263   :  { %25 = sbr.rel (!%p23_p10) target bundleno = 12 (0xc), region = 110 }
 0x266   : > { %s1633_s22 = smov %s1630_s16 }
 0x26a   :  { %717 = vsyncpa [#allocation3], 1 }
 0x26b   :  { %719 = vsyncpa [#allocation3 + $0x1], 1 }
 0x26c   :  { %720 = vsyncpa [#allocation6], 1 }
 0x26d   :  { %722 = vsyncpa [#allocation6 + $0x1], 1 }
 0x26e   :  { %723 = vsyncpa [#allocation9], 1 }
 0x26f   :  { %724 = vsyncpa [#allocation4], 1 }
 0x270   :  { %726 = vsyncpa [#allocation4 + $0x1], 1 }

</bundles_post_ra>
